<compile_context>
chip_gen: v7x
topology: tpu7x:2x2x1
jax: 0.10.0
libtpu: 0.0.40
codegen_flags: <defaults>
</compile_context>

<pallas_src>
import functools

import jax
import jax.numpy as jnp
from jax import lax
from jax.experimental import pallas as pl
from jax.experimental.pallas import tpu as pltpu


# ---------------------------------------------------------------------------
# Pass 1: per-image 3x3 "same" conv (channels-first, spatial on lanes)
#         + per-image per-channel sum / sum-of-squares (partial BN stats)
# ---------------------------------------------------------------------------
def _conv_stats_kernel(x_ref, w_ref, y_ref, stats_ref, xp_ref, *, H, W, Cin, Cout):
    HW = H * W
    PAD = W + 1                      # halo reach of a 3x3 kernel in flat (row-major) layout

    # Flat zero-padded copy of this image. Only the two thin border slabs are
    # zeroed (not the whole buffer); the interior is written exactly once.
    xp_ref[:, 0:PAD] = jnp.zeros((Cin, PAD), jnp.float32)
    xp_ref[:, PAD + HW:PAD + HW + PAD] = jnp.zeros((Cin, PAD), jnp.float32)
    xp_ref[:, PAD:PAD + HW] = x_ref[0]

    # Column index of each output position: masks the dx != 0 taps that would
    # otherwise wrap across a row edge in the flattened layout (dy out-of-range
    # taps already land in the zero pad slabs).
    col = lax.broadcasted_iota(jnp.int32, (1, HW), 1) % W

    # 9 shifted (Cout, Cin) @ (Cin, HW) matmuls accumulated in f32 vregs
    # (no im2col scratch; with Cin=4 the shallow-K form is fine — the kernel
    # is data-movement bound, not MXU bound).
    acc = jnp.zeros((Cout, HW), jnp.float32)
    for k in range(9):
        dy, dx = k // 3 - 1, k % 3 - 1
        start = PAD + dy * W + dx                     # static, in [0, 2*PAD]
        xs = xp_ref[:, start:start + HW]              # (Cin, HW), lane-dense
        if dx == -1:
            xs = jnp.where(col >= 1, xs, 0.0)
        elif dx == 1:
            xs = jnp.where(col <= W - 2, xs, 0.0)
        acc = acc + jnp.dot(w_ref[k], xs, preferred_element_type=jnp.float32)

    # NOTE: the Conv2d bias is intentionally NOT added — a per-channel constant
    # is removed exactly by the training-mode BN mean subtraction (dead compute).

    # Lane-dense (Cout, HW) store of the pre-BN conv activation.
    y_ref[0] = acc

    # Partial BN statistics for this image (single pass: sum and sum-of-squares).
    s1 = jnp.sum(acc, axis=1, keepdims=True)          # (Cout, 1)
    s2 = jnp.sum(acc * acc, axis=1, keepdims=True)    # (Cout, 1)
    stats_ref[0] = jnp.concatenate([s1, s2], axis=1)  # (Cout, 2)


# ---------------------------------------------------------------------------
# Pass 2: finalize BN stats (tiny per-channel prologue) + folded affine + ReLU
# ---------------------------------------------------------------------------
def _bn_relu_kernel(y_ref, stats_ref, g_ref, b_ref, o_ref, *, inv_count, eps):
    tot = jnp.sum(stats_ref[...], axis=0)             # (Cout, 2) reduce over batch
    mean = tot[:, 0:1] * inv_count                     # (Cout, 1)
    var = tot[:, 1:2] * inv_count - mean * mean        # biased variance (torch BN)
    s = g_ref[...] * lax.rsqrt(var + eps)              # (Cout, 1)
    t = b_ref[...] - mean * s                          # (Cout, 1)
    # Single fused normalize+affine+ReLU pass, lane-dense (Cout, HW) store.
    o_ref[0] = jnp.maximum(y_ref[0] * s + t, 0.0)


# ---------------------------------------------------------------------------
# Wrapper (NCHW in -> NCHW out, no transposes; two batch-parallel pallas_calls)
# ---------------------------------------------------------------------------
def convblock_forward(x_nchw, params, *, eps=1e-5):
    x_nchw = x_nchw.astype(jnp.float32)
    B, Cin, H, W = x_nchw.shape
    HW = H * W
    Cout = params["w"].shape[-1]

    # Keep channels-first; just flatten spatial so H*W sits on the 128-lane axis.
    x = x_nchw.reshape(B, Cin, HW)

    # 3x3 taps as 9 small (Cout, Cin) matrices (weight stored HWIO).
    w_taps = jnp.transpose(params["w"], (0, 1, 3, 2)).reshape(9, Cout, Cin)
    w_taps = w_taps.astype(jnp.float32)

    conv_kernel = functools.partial(_conv_stats_kernel, H=H, W=W, Cin=Cin, Cout=Cout)

    y, stats = pl.pallas_call(
        conv_kernel,
        out_shape=(
            jax.ShapeDtypeStruct((B, Cout, HW), jnp.float32),   # pre-BN conv
            jax.ShapeDtypeStruct((B, Cout, 2), jnp.float32),    # per-image sum/sumsq
        ),
        grid=(B,),
        in_specs=[
            pl.BlockSpec((1, Cin, HW), lambda b: (b, 0, 0)),     # x (one image)
            pl.BlockSpec((9, Cout, Cin), lambda b: (0, 0, 0)),   # conv taps
        ],
        out_specs=(
            pl.BlockSpec((1, Cout, HW), lambda b: (b, 0, 0)),
            pl.BlockSpec((1, Cout, 2), lambda b: (b, 0, 0)),
        ),
        scratch_shapes=[
            pltpu.VMEM((Cin, HW + 2 * (W + 1)), jnp.float32),    # flat padded image
        ],
        compiler_params=pltpu.CompilerParams(dimension_semantics=("parallel",)),
    )(x, w_taps)

    bn_kernel = functools.partial(_bn_relu_kernel, inv_count=1.0 / (B * HW), eps=eps)
    gamma = params["gamma"].reshape(Cout, 1).astype(jnp.float32)
    beta = params["beta"].reshape(Cout, 1).astype(jnp.float32)

    out = pl.pallas_call(
        bn_kernel,
        out_shape=jax.ShapeDtypeStruct((B, Cout, HW), jnp.float32),
        grid=(B,),
        in_specs=[
            pl.BlockSpec((1, Cout, HW), lambda b: (b, 0, 0)),    # conv activation
            pl.BlockSpec((B, Cout, 2), lambda b: (0, 0, 0)),     # all partial stats
            pl.BlockSpec((Cout, 1), lambda b: (0, 0)),           # gamma
            pl.BlockSpec((Cout, 1), lambda b: (0, 0)),           # beta
        ],
        out_specs=pl.BlockSpec((1, Cout, HW), lambda b: (b, 0, 0)),
        compiler_params=pltpu.CompilerParams(dimension_semantics=("parallel",)),
    )(y, stats, gamma, beta)

    return out.reshape(B, Cout, H, W)


# ---------------------------------------------------------------------------
# Pure-JAX reference (same math, conv bias included — it cancels under BN)
# TODO(synk): BatchNorm2d running_mean/running_var state updates are not emitted.
# ---------------------------------------------------------------------------
def convblock_reference(x_nchw, params, eps=1e-5):
    x = x_nchw.astype(jnp.float32)
    y = lax.conv_general_dilated(
        x, params["w"], window_strides=(1, 1), padding="SAME",
        dimension_numbers=("NCHW", "HWIO", "NCHW"))
    y = y + params["b"].reshape(1, -1, 1, 1)
    mean = jnp.mean(y, axis=(0, 2, 3), keepdims=True)
    var = jnp.mean(jnp.square(y - mean), axis=(0, 2, 3), keepdims=True)
    y = (y - mean) * lax.rsqrt(var + eps)
    y = y * params["gamma"].reshape(1, -1, 1, 1) + params["beta"].reshape(1, -1, 1, 1)
    return jnp.maximum(y, 0.0)


# ---------------------------------------------------------------------------
# Deterministic synthetic parameters
# ---------------------------------------------------------------------------
def init_params(key, cin, cout):
    kw, kb = jax.random.split(key)
    return {
        # conv weight stored HWIO; torch's (Cout, Cin, 3, 3) maps via transpose(2,3,1,0)
        "w": jax.random.normal(kw, (3, 3, cin, cout), jnp.float32) * 0.1,
        "b": jax.random.normal(kb, (cout,), jnp.float32) * 0.1,
        "gamma": jnp.ones((cout,), jnp.float32),   # nn.BatchNorm2d affine defaults
        "beta": jnp.zeros((cout,), jnp.float32),
    }


if __name__ == "__main__":
    in_channel, out_channel = 4, 16
    B, H, W = 2, 16, 16

    key = jax.random.PRNGKey(0)
    kx, kp = jax.random.split(key)
    x = jax.random.normal(kx, (B, in_channel, H, W), jnp.float32)
    params = init_params(kp, in_channel, out_channel)

    fwd = jax.jit(lambda inp: convblock_forward(inp, params))
    out = jax.block_until_ready(fwd(x))

    assert out.shape == (B, out_channel, H, W), out.shape
    assert bool(jnp.all(jnp.isfinite(out)))
    assert bool(jnp.all(out >= 0.0))        # final ReLU

    ref = convblock_reference(x, params)
    max_err = float(jnp.max(jnp.abs(out - ref)))
    assert max_err < 1e-3, max_err          # f32 end-to-end

    print("KERNEL_OK")
</pallas_src>

<mosaic_0001>
module attributes {stable_mosaic.version = 11 : i64} {
  func.func @_bn_relu_kernel(%arg0: i32, %arg1: memref<1x16x256xf32, #tpu.memory_space<vmem>>, %arg2: memref<2x16x2xf32, #tpu.memory_space<vmem>>, %arg3: memref<16x1xf32, #tpu.memory_space<vmem>>, %arg4: memref<16x1xf32, #tpu.memory_space<vmem>>, %arg5: memref<1x16x256xf32, #tpu.memory_space<vmem>>) attributes {dimension_semantics = [#tpu.dimension_semantics<parallel>], iteration_bounds = array<i64: 2>, scalar_prefetch = 0 : i64, scratch_operands = 0 : i64, tpu.core_type = #tpu.core_type<tc>, window_params = [{transform_indices = @transform_0, window_bounds = array<i64: 1, 16, 256>}, {pipeline_mode = #tpu.pipeline_mode<synchronous>, transform_indices = @transform_1, window_bounds = array<i64: 2, 16, 2>}, {pipeline_mode = #tpu.pipeline_mode<synchronous>, transform_indices = @transform_2, window_bounds = array<i64: 16, 1>}, {pipeline_mode = #tpu.pipeline_mode<synchronous>, transform_indices = @transform_3, window_bounds = array<i64: 16, 1>}, {transform_indices = @transform_4, window_bounds = array<i64: 1, 16, 256>}]} {
    %c0 = arith.constant 0 : index
    %c0_0 = arith.constant 0 : index
    %c0_1 = arith.constant 0 : index
    %0 = vector.load %arg2[%c0, %c0_0, %c0_1] : memref<2x16x2xf32, #tpu.memory_space<vmem>>, vector<2x16x2xf32>
    %cst = arith.constant dense<0.000000e+00> : vector<16x2xf32>
    %1 = vector.multi_reduction <add>, %0, %cst [0] : vector<2x16x2xf32> to vector<16x2xf32>
    %2 = vector.extract_strided_slice %1 {offsets = [0, 0], sizes = [16, 1], strides = [1, 1]} : vector<16x2xf32> to vector<16x1xf32>
    %cst_2 = arith.constant 0.001953125 : f32
    %3 = vector.broadcast %cst_2 : f32 to vector<16x1xf32>
    %4 = arith.mulf %2, %3 : vector<16x1xf32>
    %5 = vector.extract_strided_slice %1 {offsets = [0, 1], sizes = [16, 1], strides = [1, 1]} : vector<16x2xf32> to vector<16x1xf32>
    %cst_3 = arith.constant 0.001953125 : f32
    %6 = vector.broadcast %cst_3 : f32 to vector<16x1xf32>
    %7 = arith.mulf %5, %6 : vector<16x1xf32>
    %8 = arith.mulf %4, %4 : vector<16x1xf32>
    %9 = arith.subf %7, %8 : vector<16x1xf32>
    %c0_4 = arith.constant 0 : index
    %c0_5 = arith.constant 0 : index
    %10 = vector.load %arg3[%c0_4, %c0_5] : memref<16x1xf32, #tpu.memory_space<vmem>>, vector<16x1xf32>
    %cst_6 = arith.constant 9.99999974E-6 : f32
    %11 = vector.broadcast %cst_6 : f32 to vector<16x1xf32>
    %12 = arith.addf %9, %11 : vector<16x1xf32>
    %13 = math.rsqrt %12 : vector<16x1xf32>
    %14 = arith.mulf %10, %13 : vector<16x1xf32>
    %c0_7 = arith.constant 0 : index
    %c0_8 = arith.constant 0 : index
    %15 = vector.load %arg4[%c0_7, %c0_8] : memref<16x1xf32, #tpu.memory_space<vmem>>, vector<16x1xf32>
    %16 = arith.mulf %4, %14 : vector<16x1xf32>
    %17 = arith.subf %15, %16 : vector<16x1xf32>
    %c0_9 = arith.constant 0 : index
    %c0_10 = arith.constant 0 : index
    %c0_11 = arith.constant 0 : index
    %18 = vector.load %arg1[%c0_9, %c0_10, %c0_11] : memref<1x16x256xf32, #tpu.memory_space<vmem>>, vector<1x16x256xf32>
    %19 = vector.shape_cast %18 : vector<1x16x256xf32> to vector<16x256xf32>
    %20 = vector.broadcast %14 : vector<16x1xf32> to vector<16x256xf32>
    %21 = arith.mulf %19, %20 : vector<16x256xf32>
    %22 = vector.broadcast %17 : vector<16x1xf32> to vector<16x256xf32>
    %23 = arith.addf %21, %22 : vector<16x256xf32>
    %cst_12 = arith.constant 0.000000e+00 : f32
    %24 = vector.broadcast %cst_12 : f32 to vector<16x256xf32>
    %25 = arith.maximumf %23, %24 : vector<16x256xf32>
    %c0_13 = arith.constant 0 : index
    %c0_14 = arith.constant 0 : index
    %c0_15 = arith.constant 0 : index
    %26 = vector.load %arg5[%c0_13, %c0_14, %c0_15] : memref<1x16x256xf32, #tpu.memory_space<vmem>>, vector<1x16x256xf32>
    %27 = vector.shape_cast %26 : vector<1x16x256xf32> to vector<16x256xf32>
    %28 = vector.shape_cast %25 : vector<16x256xf32> to vector<1x16x256xf32>
    tpu.vector_store %arg5[%c0_13, %c0_14, %c0_15], %28 {strides = array<i32>} : memref<1x16x256xf32, #tpu.memory_space<vmem>>, vector<1x16x256xf32>,
    return
  }
  func.func @transform_0(%arg0: i32) -> (i32, i32, i32) {
    %c0_i32 = arith.constant 0 : i32
    %c0_i32_0 = arith.constant 0 : i32
    %c0_i32_1 = arith.constant 0 : i32
    return %arg0, %c0_i32, %c0_i32_0 : i32, i32, i32
  }
  func.func @transform_1(%arg0: i32) -> (i32, i32, i32) {
    %c0_i32 = arith.constant 0 : i32
    %c0_i32_0 = arith.constant 0 : i32
    %c0_i32_1 = arith.constant 0 : i32
    %c0_i32_2 = arith.constant 0 : i32
    return %c0_i32, %c0_i32_0, %c0_i32_1 : i32, i32, i32
  }
  func.func @transform_2(%arg0: i32) -> (i32, i32) {
    %c0_i32 = arith.constant 0 : i32
    %c0_i32_0 = arith.constant 0 : i32
    %c0_i32_1 = arith.constant 0 : i32
    return %c0_i32, %c0_i32_0 : i32, i32
  }
  func.func @transform_3(%arg0: i32) -> (i32, i32) {
    %c0_i32 = arith.constant 0 : i32
    %c0_i32_0 = arith.constant 0 : i32
    %c0_i32_1 = arith.constant 0 : i32
    return %c0_i32, %c0_i32_0 : i32, i32
  }
  func.func @transform_4(%arg0: i32) -> (i32, i32, i32) {
    %c0_i32 = arith.constant 0 : i32
    %c0_i32_0 = arith.constant 0 : i32
    %c0_i32_1 = arith.constant 0 : i32
    return %arg0, %c0_i32, %c0_i32_0 : i32, i32, i32
  }
}

module attributes {stable_mosaic.version = 11 : i64} {
  func.func @_conv_stats_kernel(%arg0: i32, %arg1: memref<1x4x256xf32, #tpu.memory_space<vmem>>, %arg2: memref<9x16x4xf32, #tpu.memory_space<vmem>>, %arg3: memref<1x16x256xf32, #tpu.memory_space<vmem>>, %arg4: memref<1x16x2xf32, #tpu.memory_space<vmem>>, %arg5: memref<4x290xf32, #tpu.memory_space<vmem>>) attributes {dimension_semantics = [#tpu.dimension_semantics<parallel>], iteration_bounds = array<i64: 2>, scalar_prefetch = 0 : i64, scratch_operands = 1 : i64, tpu.core_type = #tpu.core_type<tc>, window_params = [{transform_indices = @transform_0, window_bounds = array<i64: 1, 4, 256>}, {pipeline_mode = #tpu.pipeline_mode<synchronous>, transform_indices = @transform_1, window_bounds = array<i64: 9, 16, 4>}, {transform_indices = @transform_2, window_bounds = array<i64: 1, 16, 256>}, {transform_indices = @transform_3, window_bounds = array<i64: 1, 16, 2>}]} {
    %cst = arith.constant 0.000000e+00 : f32
    %0 = vector.broadcast %cst : f32 to vector<4x17xf32>
    %c0 = arith.constant 0 : index
    %c0_0 = arith.constant 0 : index
    %1 = vector.load %arg5[%c0, %c0_0] : memref<4x290xf32, #tpu.memory_space<vmem>>, vector<4x17xf32>
    tpu.vector_store %arg5[%c0, %c0_0], %0 {strides = array<i32>} : memref<4x290xf32, #tpu.memory_space<vmem>>, vector<4x17xf32>,
    %cst_1 = arith.constant 0.000000e+00 : f32
    %2 = vector.broadcast %cst_1 : f32 to vector<4x17xf32>
    %c0_2 = arith.constant 0 : index
    %c273 = arith.constant 273 : index
    %3 = vector.load %arg5[%c0_2, %c273] : memref<4x290xf32, #tpu.memory_space<vmem>>, vector<4x17xf32>
    tpu.vector_store %arg5[%c0_2, %c273], %2 {strides = array<i32>} : memref<4x290xf32, #tpu.memory_space<vmem>>, vector<4x17xf32>,
    %c0_3 = arith.constant 0 : index
    %c0_4 = arith.constant 0 : index
    %c0_5 = arith.constant 0 : index
    %4 = vector.load %arg1[%c0_3, %c0_4, %c0_5] : memref<1x4x256xf32, #tpu.memory_space<vmem>>, vector<1x4x256xf32>
    %5 = vector.shape_cast %4 : vector<1x4x256xf32> to vector<4x256xf32>
    %c0_6 = arith.constant 0 : index
    %c17 = arith.constant 17 : index
    %6 = vector.load %arg5[%c0_6, %c17] : memref<4x290xf32, #tpu.memory_space<vmem>>, vector<4x256xf32>
    tpu.vector_store %arg5[%c0_6, %c17], %5 {strides = array<i32>} : memref<4x290xf32, #tpu.memory_space<vmem>>, vector<4x256xf32>,
    %7 = tpu.iota {dimensions = array<i32: 1>} : vector<1x256xi32>
    %c16_i32 = arith.constant 16 : i32
    %c0_i32 = arith.constant 0 : i32
    %8 = arith.cmpi eq, %c16_i32, %c0_i32 : i32
    %c1_i32 = arith.constant 1 : i32
    %9 = arith.select %8, %c1_i32, %c16_i32 : i32
    %10 = vector.broadcast %9 : i32 to vector<1x256xi32>
    %11 = arith.remsi %7, %10 : vector<1x256xi32>
    %c0_i32_7 = arith.constant 0 : i32
    %12 = vector.broadcast %c0_i32_7 : i32 to vector<1x256xi32>
    %13 = arith.cmpi ne, %11, %12 : vector<1x256xi32>
    %c0_i32_8 = arith.constant 0 : i32
    %14 = vector.broadcast %c0_i32_8 : i32 to vector<1x256xi32>
    %15 = arith.cmpi slt, %11, %14 : vector<1x256xi32>
    %c0_i32_9 = arith.constant 0 : i32
    %16 = arith.cmpi slt, %9, %c0_i32_9 : i32
    %17 = vector.broadcast %16 : i1 to vector<1x256xi1>
    %18 = vector.broadcast %17 : vector<1x256xi1> to vector<1x256xi1>
    %19 = arith.xori %15, %18 : vector<1x256xi1>
    %20 = arith.andi %19, %13 : vector<1x256xi1>
    %21 = vector.broadcast %9 : i32 to vector<1x256xi32>
    %22 = arith.addi %11, %21 : vector<1x256xi32>
    %23 = arith.select %20, %22, %11 : vector<1x256xi1>, vector<1x256xi32>
    %cst_10 = arith.constant 0.000000e+00 : f32
    %24 = vector.broadcast %cst_10 : f32 to vector<16x256xf32>
    %c0_11 = arith.constant 0 : index
    %c0_12 = arith.constant 0 : index
    %25 = vector.load %arg5[%c0_11, %c0_12] : memref<4x290xf32, #tpu.memory_space<vmem>>, vector<4x256xf32>
    %c1_i32_13 = arith.constant 1 : i32
    %26 = vector.broadcast %c1_i32_13 : i32 to vector<1x256xi32>
    %27 = arith.cmpi sge, %23, %26 : vector<1x256xi32>
    %cst_14 = arith.constant 0.000000e+00 : f32
    %28 = vector.shape_cast %27 : vector<1x256xi1> to vector<1x256xi1>
    %29 = vector.broadcast %28 : vector<1x256xi1> to vector<4x256xi1>
    %30 = vector.broadcast %cst_14 : f32 to vector<4x256xf32>
    %31 = arith.select %29, %25, %30 : vector<4x256xi1>, vector<4x256xf32>
    %c0_15 = arith.constant 0 : index
    %c0_16 = arith.constant 0 : index
    %c0_17 = arith.constant 0 : index
    %32 = vector.load %arg2[%c0_15, %c0_16, %c0_17] : memref<9x16x4xf32, #tpu.memory_space<vmem>>, vector<1x16x4xf32>
    %33 = vector.shape_cast %32 : vector<1x16x4xf32> to vector<16x4xf32>
    %cst_18 = arith.constant dense<0.000000e+00> : vector<16x256xf32>
    %34 = tpu.matmul %33, %31, %cst_18 {dimension_numbers = #tpu.dot_dimension_numbers<[1], [0], [0], [1], [0, 0, 1, 1], [], []>} : vector<16x4xf32>, vector<4x256xf32>, vector<16x256xf32> -> vector<16x256xf32>
    %35 = arith.addf %24, %34 : vector<16x256xf32>
    %c0_19 = arith.constant 0 : index
    %c1 = arith.constant 1 : index
    %36 = vector.load %arg5[%c0_19, %c1] : memref<4x290xf32, #tpu.memory_space<vmem>>, vector<4x256xf32>
    %c1_20 = arith.constant 1 : index
    %c0_21 = arith.constant 0 : index
    %c0_22 = arith.constant 0 : index
    %37 = vector.load %arg2[%c1_20, %c0_21, %c0_22] : memref<9x16x4xf32, #tpu.memory_space<vmem>>, vector<1x16x4xf32>
    %38 = vector.shape_cast %37 : vector<1x16x4xf32> to vector<16x4xf32>
    %cst_23 = arith.constant dense<0.000000e+00> : vector<16x256xf32>
    %39 = tpu.matmul %38, %36, %cst_23 {dimension_numbers = #tpu.dot_dimension_numbers<[1], [0], [0], [1], [0, 0, 1, 1], [], []>} : vector<16x4xf32>, vector<4x256xf32>, vector<16x256xf32> -> vector<16x256xf32>
    %40 = arith.addf %35, %39 : vector<16x256xf32>
    %c0_24 = arith.constant 0 : index
    %c2 = arith.constant 2 : index
    %41 = vector.load %arg5[%c0_24, %c2] : memref<4x290xf32, #tpu.memory_space<vmem>>, vector<4x256xf32>
    %c14_i32 = arith.constant 14 : i32
    %42 = vector.broadcast %c14_i32 : i32 to vector<1x256xi32>
    %43 = arith.cmpi sle, %23, %42 : vector<1x256xi32>
    %cst_25 = arith.constant 0.000000e+00 : f32
    %44 = vector.shape_cast %43 : vector<1x256xi1> to vector<1x256xi1>
    %45 = vector.broadcast %44 : vector<1x256xi1> to vector<4x256xi1>
    %46 = vector.broadcast %cst_25 : f32 to vector<4x256xf32>
    %47 = arith.select %45, %41, %46 : vector<4x256xi1>, vector<4x256xf32>
    %c2_26 = arith.constant 2 : index
    %c0_27 = arith.constant 0 : index
    %c0_28 = arith.constant 0 : index
    %48 = vector.load %arg2[%c2_26, %c0_27, %c0_28] : memref<9x16x4xf32, #tpu.memory_space<vmem>>, vector<1x16x4xf32>
    %49 = vector.shape_cast %48 : vector<1x16x4xf32> to vector<16x4xf32>
    %cst_29 = arith.constant dense<0.000000e+00> : vector<16x256xf32>
    %50 = tpu.matmul %49, %47, %cst_29 {dimension_numbers = #tpu.dot_dimension_numbers<[1], [0], [0], [1], [0, 0, 1, 1], [], []>} : vector<16x4xf32>, vector<4x256xf32>, vector<16x256xf32> -> vector<16x256xf32>
    %51 = arith.addf %40, %50 : vector<16x256xf32>
    %c0_30 = arith.constant 0 : index
    %c16 = arith.constant 16 : index
    %52 = vector.load %arg5[%c0_30, %c16] : memref<4x290xf32, #tpu.memory_space<vmem>>, vector<4x256xf32>
    %c1_i32_31 = arith.constant 1 : i32
    %53 = vector.broadcast %c1_i32_31 : i32 to vector<1x256xi32>
    %54 = arith.cmpi sge, %23, %53 : vector<1x256xi32>
    %cst_32 = arith.constant 0.000000e+00 : f32
    %55 = vector.shape_cast %54 : vector<1x256xi1> to vector<1x256xi1>
    %56 = vector.broadcast %55 : vector<1x256xi1> to vector<4x256xi1>
    %57 = vector.broadcast %cst_32 : f32 to vector<4x256xf32>
    %58 = arith.select %56, %52, %57 : vector<4x256xi1>, vector<4x256xf32>
    %c3 = arith.constant 3 : index
    %c0_33 = arith.constant 0 : index
    %c0_34 = arith.constant 0 : index
    %59 = vector.load %arg2[%c3, %c0_33, %c0_34] : memref<9x16x4xf32, #tpu.memory_space<vmem>>, vector<1x16x4xf32>
    %60 = vector.shape_cast %59 : vector<1x16x4xf32> to vector<16x4xf32>
    %cst_35 = arith.constant dense<0.000000e+00> : vector<16x256xf32>
    %61 = tpu.matmul %60, %58, %cst_35 {dimension_numbers = #tpu.dot_dimension_numbers<[1], [0], [0], [1], [0, 0, 1, 1], [], []>} : vector<16x4xf32>, vector<4x256xf32>, vector<16x256xf32> -> vector<16x256xf32>
    %62 = arith.addf %51, %61 : vector<16x256xf32>
    %c0_36 = arith.constant 0 : index
    %c17_37 = arith.constant 17 : index
    %63 = vector.load %arg5[%c0_36, %c17_37] : memref<4x290xf32, #tpu.memory_space<vmem>>, vector<4x256xf32>
    %c4 = arith.constant 4 : index
    %c0_38 = arith.constant 0 : index
    %c0_39 = arith.constant 0 : index
    %64 = vector.load %arg2[%c4, %c0_38, %c0_39] : memref<9x16x4xf32, #tpu.memory_space<vmem>>, vector<1x16x4xf32>
    %65 = vector.shape_cast %64 : vector<1x16x4xf32> to vector<16x4xf32>
    %cst_40 = arith.constant dense<0.000000e+00> : vector<16x256xf32>
    %66 = tpu.matmul %65, %63, %cst_40 {dimension_numbers = #tpu.dot_dimension_numbers<[1], [0], [0], [1], [0, 0, 1, 1], [], []>} : vector<16x4xf32>, vector<4x256xf32>, vector<16x256xf32> -> vector<16x256xf32>
    %67 = arith.addf %62, %66 : vector<16x256xf32>
    %c0_41 = arith.constant 0 : index
    %c18 = arith.constant 18 : index
    %68 = vector.load %arg5[%c0_41, %c18] : memref<4x290xf32, #tpu.memory_space<vmem>>, vector<4x256xf32>
    %c14_i32_42 = arith.constant 14 : i32
    %69 = vector.broadcast %c14_i32_42 : i32 to vector<1x256xi32>
    %70 = arith.cmpi sle, %23, %69 : vector<1x256xi32>
    %cst_43 = arith.constant 0.000000e+00 : f32
    %71 = vector.shape_cast %70 : vector<1x256xi1> to vector<1x256xi1>
    %72 = vector.broadcast %71 : vector<1x256xi1> to vector<4x256xi1>
    %73 = vector.broadcast %cst_43 : f32 to vector<4x256xf32>
    %74 = arith.select %72, %68, %73 : vector<4x256xi1>, vector<4x256xf32>
    %c5 = arith.constant 5 : index
    %c0_44 = arith.constant 0 : index
    %c0_45 = arith.constant 0 : index
    %75 = vector.load %arg2[%c5, %c0_44, %c0_45] : memref<9x16x4xf32, #tpu.memory_space<vmem>>, vector<1x16x4xf32>
    %76 = vector.shape_cast %75 : vector<1x16x4xf32> to vector<16x4xf32>
    %cst_46 = arith.constant dense<0.000000e+00> : vector<16x256xf32>
    %77 = tpu.matmul %76, %74, %cst_46 {dimension_numbers = #tpu.dot_dimension_numbers<[1], [0], [0], [1], [0, 0, 1, 1], [], []>} : vector<16x4xf32>, vector<4x256xf32>, vector<16x256xf32> -> vector<16x256xf32>
    %78 = arith.addf %67, %77 : vector<16x256xf32>
    %c0_47 = arith.constant 0 : index
    %c32 = arith.constant 32 : index
    %79 = vector.load %arg5[%c0_47, %c32] : memref<4x290xf32, #tpu.memory_space<vmem>>, vector<4x256xf32>
    %c1_i32_48 = arith.constant 1 : i32
    %80 = vector.broadcast %c1_i32_48 : i32 to vector<1x256xi32>
    %81 = arith.cmpi sge, %23, %80 : vector<1x256xi32>
    %cst_49 = arith.constant 0.000000e+00 : f32
    %82 = vector.shape_cast %81 : vector<1x256xi1> to vector<1x256xi1>
    %83 = vector.broadcast %82 : vector<1x256xi1> to vector<4x256xi1>
    %84 = vector.broadcast %cst_49 : f32 to vector<4x256xf32>
    %85 = arith.select %83, %79, %84 : vector<4x256xi1>, vector<4x256xf32>
    %c6 = arith.constant 6 : index
    %c0_50 = arith.constant 0 : index
    %c0_51 = arith.constant 0 : index
    %86 = vector.load %arg2[%c6, %c0_50, %c0_51] : memref<9x16x4xf32, #tpu.memory_space<vmem>>, vector<1x16x4xf32>
    %87 = vector.shape_cast %86 : vector<1x16x4xf32> to vector<16x4xf32>
    %cst_52 = arith.constant dense<0.000000e+00> : vector<16x256xf32>
    %88 = tpu.matmul %87, %85, %cst_52 {dimension_numbers = #tpu.dot_dimension_numbers<[1], [0], [0], [1], [0, 0, 1, 1], [], []>} : vector<16x4xf32>, vector<4x256xf32>, vector<16x256xf32> -> vector<16x256xf32>
    %89 = arith.addf %78, %88 : vector<16x256xf32>
    %c0_53 = arith.constant 0 : index
    %c33 = arith.constant 33 : index
    %90 = vector.load %arg5[%c0_53, %c33] : memref<4x290xf32, #tpu.memory_space<vmem>>, vector<4x256xf32>
    %c7 = arith.constant 7 : index
    %c0_54 = arith.constant 0 : index
    %c0_55 = arith.constant 0 : index
    %91 = vector.load %arg2[%c7, %c0_54, %c0_55] : memref<9x16x4xf32, #tpu.memory_space<vmem>>, vector<1x16x4xf32>
    %92 = vector.shape_cast %91 : vector<1x16x4xf32> to vector<16x4xf32>
    %cst_56 = arith.constant dense<0.000000e+00> : vector<16x256xf32>
    %93 = tpu.matmul %92, %90, %cst_56 {dimension_numbers = #tpu.dot_dimension_numbers<[1], [0], [0], [1], [0, 0, 1, 1], [], []>} : vector<16x4xf32>, vector<4x256xf32>, vector<16x256xf32> -> vector<16x256xf32>
    %94 = arith.addf %89, %93 : vector<16x256xf32>
    %c0_57 = arith.constant 0 : index
    %c34 = arith.constant 34 : index
    %95 = vector.load %arg5[%c0_57, %c34] : memref<4x290xf32, #tpu.memory_space<vmem>>, vector<4x256xf32>
    %c14_i32_58 = arith.constant 14 : i32
    %96 = vector.broadcast %c14_i32_58 : i32 to vector<1x256xi32>
    %97 = arith.cmpi sle, %23, %96 : vector<1x256xi32>
    %cst_59 = arith.constant 0.000000e+00 : f32
    %98 = vector.shape_cast %97 : vector<1x256xi1> to vector<1x256xi1>
    %99 = vector.broadcast %98 : vector<1x256xi1> to vector<4x256xi1>
    %100 = vector.broadcast %cst_59 : f32 to vector<4x256xf32>
    %101 = arith.select %99, %95, %100 : vector<4x256xi1>, vector<4x256xf32>
    %c8 = arith.constant 8 : index
    %c0_60 = arith.constant 0 : index
    %c0_61 = arith.constant 0 : index
    %102 = vector.load %arg2[%c8, %c0_60, %c0_61] : memref<9x16x4xf32, #tpu.memory_space<vmem>>, vector<1x16x4xf32>
    %103 = vector.shape_cast %102 : vector<1x16x4xf32> to vector<16x4xf32>
    %cst_62 = arith.constant dense<0.000000e+00> : vector<16x256xf32>
    %104 = tpu.matmul %103, %101, %cst_62 {dimension_numbers = #tpu.dot_dimension_numbers<[1], [0], [0], [1], [0, 0, 1, 1], [], []>} : vector<16x4xf32>, vector<4x256xf32>, vector<16x256xf32> -> vector<16x256xf32>
    %105 = arith.addf %94, %104 : vector<16x256xf32>
    %c0_63 = arith.constant 0 : index
    %c0_64 = arith.constant 0 : index
    %c0_65 = arith.constant 0 : index
    %106 = vector.load %arg3[%c0_63, %c0_64, %c0_65] : memref<1x16x256xf32, #tpu.memory_space<vmem>>, vector<1x16x256xf32>
    %107 = vector.shape_cast %106 : vector<1x16x256xf32> to vector<16x256xf32>
    %108 = vector.shape_cast %105 : vector<16x256xf32> to vector<1x16x256xf32>
    tpu.vector_store %arg3[%c0_63, %c0_64, %c0_65], %108 {strides = array<i32>} : memref<1x16x256xf32, #tpu.memory_space<vmem>>, vector<1x16x256xf32>,
    %cst_66 = arith.constant dense<0.000000e+00> : vector<16xf32>
    %109 = vector.multi_reduction <add>, %105, %cst_66 [1] : vector<16x256xf32> to vector<16xf32>
    %110 = vector.shape_cast %109 : vector<16xf32> to vector<16x1xf32>
    %111 = arith.mulf %105, %105 : vector<16x256xf32>
    %cst_67 = arith.constant dense<0.000000e+00> : vector<16xf32>
    %112 = vector.multi_reduction <add>, %111, %cst_67 [1] : vector<16x256xf32> to vector<16xf32>
    %113 = vector.shape_cast %112 : vector<16xf32> to vector<16x1xf32>
    %114 = tpu.concatenate %110, %113 in 1 : vector<16x1xf32>, vector<16x1xf32> -> vector<16x2xf32>
    %c0_68 = arith.constant 0 : index
    %c0_69 = arith.constant 0 : index
    %c0_70 = arith.constant 0 : index
    %115 = vector.load %arg4[%c0_68, %c0_69, %c0_70] : memref<1x16x2xf32, #tpu.memory_space<vmem>>, vector<1x16x2xf32>
    %116 = vector.shape_cast %115 : vector<1x16x2xf32> to vector<16x2xf32>
    %117 = vector.shape_cast %114 : vector<16x2xf32> to vector<1x16x2xf32>
    tpu.vector_store %arg4[%c0_68, %c0_69, %c0_70], %117 {strides = array<i32>} : memref<1x16x2xf32, #tpu.memory_space<vmem>>, vector<1x16x2xf32>,
    return
  }
  func.func @transform_0(%arg0: i32) -> (i32, i32, i32) {
    %c0_i32 = arith.constant 0 : i32
    %c0_i32_0 = arith.constant 0 : i32
    %c0_i32_1 = arith.constant 0 : i32
    return %arg0, %c0_i32, %c0_i32_0 : i32, i32, i32
  }
  func.func @transform_1(%arg0: i32) -> (i32, i32, i32) {
    %c0_i32 = arith.constant 0 : i32
    %c0_i32_0 = arith.constant 0 : i32
    %c0_i32_1 = arith.constant 0 : i32
    %c0_i32_2 = arith.constant 0 : i32
    return %c0_i32, %c0_i32_0, %c0_i32_1 : i32, i32, i32
  }
  func.func @transform_2(%arg0: i32) -> (i32, i32, i32) {
    %c0_i32 = arith.constant 0 : i32
    %c0_i32_0 = arith.constant 0 : i32
    %c0_i32_1 = arith.constant 0 : i32
    return %arg0, %c0_i32, %c0_i32_0 : i32, i32, i32
  }
  func.func @transform_3(%arg0: i32) -> (i32, i32, i32) {
    %c0_i32 = arith.constant 0 : i32
    %c0_i32_0 = arith.constant 0 : i32
    %c0_i32_1 = arith.constant 0 : i32
    return %arg0, %c0_i32, %c0_i32_0 : i32, i32, i32
  }
}

</mosaic_0001>

<bundles_post_ra>
// kernel: _lambda_.3
= control target key start
LH: loop header
LB: loop body
LE: loop exit
PB: predicated region body
PF: predicated region fallthrough
CT: control target
= control target key end

     0   :  { %s406_s15 = smov 0   ;;  %s451_s0 = inlined_call_operand.vmem [shape: f32[2,16,256], index: 0, kind: input, shape index: {}]   ;;  %s452_s1 = inlined_call_operand.vmem [shape: f32[2,16,2], index: 1, kind: input, shape index: {}]   ;;  %s453_s2 = inlined_call_operand.vmem [shape: f32[16,1], index: 2, kind: input, shape index: {}]   ;;  %s454_s3 = inlined_call_operand.vmem [shape: f32[16,1], index: 3, kind: input, shape index: {}]   ;;  %s455_s4 = inlined_call_operand.vmem [shape: f32[2,16,256], index: 4, kind: output, shape index: {}]  }
   0x1 LB: > { %s340_s16 = sadd.s32 4294967295, %s376_s15   ;;  %p344_p0 = scmp.ge.s32.totalorder %s376_s15, 1  ;;  %s376_s15 = sphi %s406_s15, %s14_s15  }
   0x2   : > { %p162_p1 = scmp.lt.s32.totalorder %s376_s15, 3 }
   0x4   : > { %p163_p2 = pnand %p344_p0, %p162_p1 }
   0x5   : > { %v198_v0 = vld [vmem:[%s452_s1] sm:$0xff] (!%p163_p2)  ;;  %v200_v1 = vld [vmem:[%s452_s1 + $0x10] sm:$0xff] (!%p163_p2)  ;;  %vm202_vm0 = vcmask (!%p163_p2), 15360   ;;  %v199_v2 = vld [vmem:[%s452_s1 + $0x8] sm:$0xff] (!%p163_p2)  ;;  %s378_s25 = smov (!%p163_p2), 1   ;;  %v379_v18 = vmov (!%p163_p2), 0  }
   0x6   : > { %166 = sbr.rel (%p163_p2) target bundleno = 402 (0x192), region = 36  ;;  %v203_v3 = vsel (!%p163_p2), %vm202_vm0, %v198_v0, 0.0  ;;  %v204_v4 = vsel (!%p163_p2), %vm202_vm0, %v200_v1, 0.0  ;;  %v201_v5 = vld [vmem:[%s452_s1 + $0x18] sm:$0xff] (!%p163_p2)  ;;  %v206_v6 = vsel (!%p163_p2), %vm202_vm0, %v199_v2, 0.0  ;;  %364 = vset.pattern.permute.xlu0 (!%p163_p2), %v379_v18  ;;  %365 = vset.pattern.permute.xlu1 (!%p163_p2), %v379_v18  ;;  %s380_s26 = smov (!%p163_p2), 127  }
   0x7   : > { %v205_v7 = vadd.f32 (!%p163_p2), %v204_v4, %v203_v3  ;;  %v207_v8 = vsel (!%p163_p2), %vm202_vm0, %v201_v5, 0.0  ;;  %v223_v23 = vld [vmem:[%s453_s2] sm:$0xff] (!%p163_p2)  ;;  %v224_v26 = vld [vmem:[%s453_s2 + $0x8] sm:$0xff] (!%p163_p2)  ;;  %p188_p3 = scmp.lt.s32.totalorder (!%p163_p2), %s340_s16, 1 }
   0x8   : > { %v208_v9 = vadd.f32 (!%p163_p2), %v207_v8, %v206_v6  ;;  %v239_v30 = vld [vmem:[%s454_s3] sm:$0xff] (!%p163_p2)  ;;  %v240_v31 = vld [vmem:[%s454_s3 + $0x8] sm:$0xff] (!%p163_p2) }
   0x9   : > { %v209_v10 = vmul.f32 (!%p163_p2), 0.001953125, %v205_v7 }
   0xa   : > { %v210_v11 = vmul.f32 (!%p163_p2), 0.001953125, %v208_v9 }
   0xb   : > { %v211_v12 = vmul.f32 (!%p163_p2), %v209_v10, %v209_v10 }
   0xc   : > { %v212_v13 = vmul.f32 (!%p163_p2), %v210_v11, %v210_v11 }
   0xd   : > { %215 = vrot.lane.b32.xlu0 %v211_v12, %s378_s25  ;;  %s457_s16 = smov (!%p188_p3, %s340_s16), 1 }
   0xe   : > { %s351_s9 = sshll.u32 %s457_s16, 5 }
   0xf   : > { %s192_s12 = scalar_lea.vmem %s451_s0, %s351_s9  ;;  %s197_s16 = scalar_lea.vmem %s455_s4, %s351_s9 }
  0x10   : > { %v245_v35 = vld [vmem:[%s192_s12] sm:$0xff]  ;;  %v246_v37 = vld [vmem:[%s192_s12 + $0x8] sm:$0xff]  ;;  %v247_v39 = vld [vmem:[%s192_s12 + $0x10] sm:$0xff] }
  0x11   : > { %217 = vrot.lane.b32.xlu0 %v212_v13, %s378_s25  ;;  %v248_v40 = vld [vmem:[%s192_s12 + $0x18] sm:$0xff] }
  0x7f   : > { %v216_v14 = vpop.permute.xlu0 %215 }
  0x80   : > { %v221_v15 = vsub.f32 %v209_v10, %v216_v14 }
  0x82   : > { %v225_v16 = vadd.f32 1e-05, %v221_v15 }
  0x83   : > { %v218_v17 = vpop.permute.xlu0 %217 }
  0x84   : > { %366 = vrsqrt.f32 %v225_v16  ;;  %v222_v19 = vsub.f32 %v210_v11, %v218_v17 }
  0x86   : > { %v226_v20 = vadd.f32 1e-05, %v222_v19 }
  0x88   : > { %368 = vrsqrt.f32 %v226_v20 }
  0x8e   : > { %v367_v21 = vpop.eup %366 }
  0x8f   : > { %231 = vrot.lane.b32.xlu1 %v367_v21, %s380_s26 }
  0x92   : > { %v369_v22 = vpop.eup %368 }
  0x93   : > { %233 = vrot.lane.b32.xlu1 %v369_v22, %s380_s26 }
 0x101   : > { %v232_v24 = vpop.permute.xlu1 %231 }
 0x102   : > { %v237_v25 = vmul.f32 %v232_v24, %v223_v23 }
 0x104   : > { %251 = vperm.xlu0 %364, %v237_v25   ;;  %v241_v28 = vmul.f32 %v237_v25, %v209_v10 }
 0x105   : > { %v234_v27 = vpop.permute.xlu1 %233 }
 0x106   : > { %v238_v29 = vmul.f32 %v234_v27, %v224_v26  ;;  %v243_v33 = vsub.f32 %v239_v30, %v241_v28 }
 0x108   : > { %v242_v32 = vmul.f32 %v238_v29, %v210_v11  ;;  %256 = vperm.xlu1 %365, %v238_v29  }
 0x10a   : > { %v244_v34 = vsub.f32 %v240_v31, %v242_v32 }
 0x10c   : > { %265 = vperm.xlu1 %365, %v243_v33   ;;  %270 = vperm.xlu0 %364, %v244_v34  }
 0x183   : > { %v252_v36 = vpop.permute.xlu0 %251 }
 0x184   : > { %v259_v41 = vmul.f32 %v252_v36, %v245_v35  ;;  %v260_v42 = vmul.f32 %v252_v36, %v246_v37 }
 0x187   : > { %v257_v38 = vpop.permute.xlu1 %256 }
 0x188   : > { %v261_v43 = vmul.f32 %v257_v38, %v247_v39  ;;  %v262_v44 = vmul.f32 %v257_v38, %v248_v40 }
 0x18b   : > { %v266_v45 = vpop.permute.xlu1 %265  ;;  %v271_v46 = vpop.permute.xlu0 %270 }
 0x18c   : > { %v273_v47 = vadd.f32 %v266_v45, %v259_v41  ;;  %v274_v48 = vadd.f32 %v266_v45, %v260_v42  ;;  %v275_v49 = vadd.f32 %v271_v46, %v261_v43  ;;  %v276_v50 = vadd.f32 %v271_v46, %v262_v44 }
 0x18e   : > { %v277_v51 = vmax.f32 %v273_v47, 0.0  ;;  %v278_v52 = vmax.f32 %v274_v48, 0.0  ;;  %v279_v53 = vmax.f32 %v275_v49, 0.0  ;;  %v280_v54 = vmax.f32 %v276_v50, 0.0 }
 0x190   : > { %281 = vst [vmem:[%s197_s16] sm:$0xff] %v277_v51  ;;  %282 = vst [vmem:[%s197_s16 + $0x8] sm:$0xff] %v278_v52 }
 0x191   : > { %283 = vst [vmem:[%s197_s16 + $0x10] sm:$0xff] %v279_v53  ;;  %284 = vst [vmem:[%s197_s16 + $0x18] sm:$0xff] %v280_v54 }
 0x192 PF: > { %s14_s15 = sadd.s32 1, %s376_s15  }
 0x193   : > { %p11_p4 = scmp.ge.s32.totalorder %s14_s15, 4  }
 0x195   :  { %13 = sbr.rel (!%p11_p4) target bundleno = 1 (0x1), region = 66 }

// kernel: _lambda_.2
= control target key start
LH: loop header
LB: loop body
LE: loop exit
PB: predicated region body
PF: predicated region fallthrough
CT: control target
= control target key end

     0   :  { %s1500_s12 = smov 0   ;;  %s1715_s0 = inlined_call_operand.vmem [shape: f32[2,4,256], index: 0, kind: input, shape index: {}]   ;;  %s1716_s1 = inlined_call_operand.vmem [shape: f32[9,16,4], index: 1, kind: input, shape index: {}]   ;;  %s1717_s2 = inlined_call_operand.vmem [shape: f32[2,16,256], index: 2, kind: output, shape index: {0}]   ;;  %s1718_s3 = inlined_call_operand.vmem [shape: f32[2,16,2], index: 3, kind: output, shape index: {1}]  }
   0x1 LB: > { %s1341_s13 = sadd.s32 4294967295, %s1468_s12   ;;  %p1345_p0 = scmp.ge.s32.totalorder %s1468_s12, 1  ;;  %s1468_s12 = sphi %s1500_s12, %s14_s12  }
   0x2   : > { %p140_p1 = scmp.lt.s32.totalorder %s1468_s12, 3 }
   0x4   : > { %p141_p2 = pnand %p1345_p0, %p140_p1 }
   0x5   : > { %p169_p3 = scmp.lt.s32.totalorder (!%p141_p2), %s1341_s13, 1  ;;  %vm184_vm0 = vcmask (!%p141_p2), 134144   ;;  %vm186_vm1 = vcmask (!%p141_p2), 273544   ;;  %v1470_v0 = vmov (!%p141_p2), 0.0   ;;  %s1471_s18 = smov (!%p141_p2), 17   ;;  %vm197_vm2 = vcmask (!%p141_p2), 1043592  }
   0x6   : > { %144 = sbr.rel (%p141_p2) target bundleno = 677 (0x2a5), region = 28  ;;  %185 = vst.msk [vmem:[#allocation2] sm:$0xf] (!%p141_p2), %vm184_vm0, %v1470_v0  ;;  %333 = vmatprep.mubr.f32.mxu1 (!%p141_p2), %v1470_v0  ;;  %760 = vmatprep.mubr.f32.mxu0 (!%p141_p2), %v1470_v0  ;;  %vm198_vm3 = vcmask (!%p141_p2), 1047556   ;;  %vm193_vm4 = vcmask (!%p141_p2), 138240   ;;  %s1472_s19 = smov (!%p141_p2), 111   ;;  %v202_v15 = vlaneseq (!%p141_p2) }
   0x7   : > { %187 = vst.msk [vmem:[#allocation2 + $0x8] sm:$0xf] (!%p141_p2), %vm186_vm1, %v1470_v0  ;;  %vm199_vm5 = vmor (!%p141_p2), %vm198_vm3, %vm197_vm2  ;;  %s1473_s20 = smov (!%p141_p2), 127   ;;  %s1474_s21 = smov (!%p141_p2), 110   ;;  %vm254_vm6 = vcmask (!%p141_p2), 1039360   ;;  %vm683_vm7 = vcmask (!%p141_p2), 908288  }
   0x8   : > { %s1475_s22 = smov (!%p141_p2), 126   ;;  %s1476_s23 = smov (!%p141_p2), 96   ;;  %v203_v16 = vand.u32 (!%p141_p2), 127, %v202_v15  ;;  %vm264_vm8 = vcmask (!%p141_p2), 1043456   ;;  %vm257_vm10 = vcmask (!%p141_p2), 31744   ;;  %v1352_v34 = vld [vmem:[%s1716_s1 + $0x10] sm:$0xff] (!%p141_p2) }
   0x9   : > { %s1477_s24 = smov (!%p141_p2), 112   ;;  %s1478_s25 = smov (!%p141_p2), 95   ;;  %v1374_v36 = vld [vmem:[%s1716_s1 + $0x40] sm:$0xff] (!%p141_p2)  ;;  %v1353_v40 = vld [vmem:[%s1716_s1 + $0x18] sm:$0xff] (!%p141_p2)  ;;  %vm788_vm12 = vcmask (!%p141_p2), 900096   ;;  %vm452_vm13 = vcmask (!%p141_p2), 1031168  }
   0xa   : > { %s1479_s26 = smov (!%p141_p2), 94   ;;  %v204_v21 = vadd.s32 (!%p141_p2), 128, %v203_v16  ;;  %v209_v22 = vand.u32 (!%p141_p2), 15, %v203_v16  ;;  %v241_v49 = vld [vmem:[%s1716_s1] sm:$0xff] (!%p141_p2)  ;;  %v1380_v54 = vld [vmem:[%s1716_s1 + $0x50] sm:$0xff] (!%p141_p2)  ;;  %v242_v58 = vld [vmem:[%s1716_s1 + $0x8] sm:$0xff] (!%p141_p2) }
   0xb   : > { %v1381_v60 = vld [vmem:[%s1716_s1 + $0x58] sm:$0xff] (!%p141_p2)  ;;  %vm566_vm1 = vcmask (!%p141_p2), 916480   ;;  %vm1019_vm2 = vcmask (!%p141_p2), 777216   ;;  %v1368_v15 = vld [vmem:[%s1716_s1 + $0x30] sm:$0xff] (!%p141_p2)  ;;  %vm1124_vm3 = vcmask (!%p141_p2), 769024   ;;  %v1375_v29 = vld [vmem:[%s1716_s1 + $0x48] sm:$0xff] (!%p141_p2) }
   0xc   : > { %v216_v25 = vand.u32 (!%p141_p2), 15, %v204_v21  ;;  %vm1542_vm9 = vcmp.ge.s32.totalorder (!%p141_p2), %v209_v22, 1  ;;  %vm1580_vm14 = vcmp.le.s32.totalorder (!%p141_p2), %v209_v22, 14 }
   0xd   : > { %s1728_s13 = smov (!%p169_p3, %s1341_s13), 1 }
   0xe   : > { %s1406_s14 = sshll.u32 %s1728_s13, 3  ;;  %vm1546_vm11 = vcmp.ge.s32.totalorder %v216_v25, 1  ;;  %vm1584_vm15 = vcmp.le.s32.totalorder %v216_v25, 14  ;;  %s1407_s11 = sshll.u32 %s1728_s13, 5 }
   0xf   : > { %s173_s17 = scalar_lea.vmem %s1715_s0, %s1406_s14  ;;  %s178_s16 = scalar_lea.vmem %s1717_s2, %s1407_s11 }
  0x10   : > { %v188_v1 = vld [vmem:[%s173_s17] sm:$0xff]  ;;  %s1408_s17 = sshll.u32 %s1728_s13, 4 }
  0x11   : > { %190 = vrot.lane.b32.xlu0 %v188_v1, %s1471_s18  ;;  %v1362_v1 = vld [vmem:[%s1716_s1 + $0x20] sm:$0xff] }
  0x83   : > { %v191_v2 = vpop.permute.xlu0 %190 }
  0x84   : > { %v192_v3 = vrot.slane %v191_v2, 4 }
  0x86   : > { %v194_v4 = vsel %vm193_vm4, %v192_v3, %v191_v2  ;;  %201 = vst.msk [vmem:[#allocation2 + $0x8] sm:$0xf] %vm184_vm0, %v192_v3  ;;  %vm902_vm0 = vcmask 785408   ;;  %v1386_v3 = vld [vmem:[%s1716_s1 + $0x60] sm:$0xff]  ;;  %vm1247_vm4 = vcmask 7168  }
  0x87   : > { %200 = vst.msk [vmem:[#allocation2] sm:$0xff] %vm199_vm5, %v194_v4  ;;  %vm1250_vm5 = vcmask 15360  }
  0x8d   : > { %v670_v5 = vld [vmem:[#allocation2 + $0x8] sm:$0xf] }
  0x8e   : > { %v243_v6 = vld [vmem:[#allocation2 + $0x8] sm:$0xf]  ;;  %681 = vrot.lane.b32.xlu0 %v670_v5, %s1472_s19  ;;  %v1520_v8 = vld [vmem:[#allocation2] sm:$0xff] }
  0x8f   : > { %252 = vrot.lane.b32.xlu1 %v243_v6, %s1473_s20  ;;  %v778_v7 = vld [vmem:[#allocation2 + $0x8] sm:$0xf]  ;;  %v1527_v9 = vcombine.high %v1520_v8, %v1520_v8  ;;  %v239_v37 = vsel %vm1542_vm9, %v1520_v8, 0.0 }
  0x90   : > { %v436_v10 = vld [vmem:[#allocation2 + $0x8] sm:$0xf] }
  0x91   : > { %v892_v11 = vld [vmem:[#allocation2 + $0x8] sm:$0xf]  ;;  %v240_v35 = vsel %vm1546_vm11, %v1527_v9, 0.0 }
  0x92   : > { %786 = vrot.lane.b32.xlu0 %v778_v7, %s1474_s21  ;;  %v556_v12 = vld [vmem:[#allocation2 + $0x8] sm:$0xf] }
  0x93   : > { %248 = vrot.lane.b32.xlu1 %v1520_v8, %s1473_s20  ;;  %v1006_v13 = vld [vmem:[#allocation2 + $0x8] sm:$0xf] }
  0x94   : > { %v1114_v14 = vld [vmem:[#allocation2 + $0x8] sm:$0xf] }
  0x96   : > { %677 = vrot.lane.b32.xlu0 %v1520_v8, %s1472_s19 }
  0x97   : > { %782 = vrot.lane.b32.xlu1 %v1520_v8, %s1474_s21 }
  0x9a   : > { %250 = vrot.lane.b32.xlu0 %v1527_v9, %s1473_s20  ;;  %s183_s20 = scalar_lea.vmem %s1718_s3, %s1408_s17 }
  0x9b   : > { %679 = vrot.lane.b32.xlu1 %v1527_v9, %s1472_s19 }
  0x9e   : > { %446 = vrot.lane.b32.xlu0 %v1520_v8, %s1475_s22 }
  0x9f   : > { %450 = vrot.lane.b32.xlu1 %v436_v10, %s1475_s22 }
  0xa2   : > { %448 = vrot.lane.b32.xlu0 %v1527_v9, %s1475_s22 }
  0xa3   : > { %784 = vrot.lane.b32.xlu1 %v1527_v9, %s1474_s21 }
  0xa6   : > { %898 = vrot.lane.b32.xlu0 %v1527_v9, %s1476_s23 }
  0xa7   : > { %900 = vrot.lane.b32.xlu1 %v892_v11, %s1476_s23 }
  0xaa   : > { %560 = vrot.lane.b32.xlu0 %v1520_v8, %s1477_s24 }
  0xab   : > { %896 = vrot.lane.b32.xlu1 %v1520_v8, %s1476_s23 }
  0xae   : > { %562 = vrot.lane.b32.xlu0 %v1527_v9, %s1477_s24 }
  0xaf   : > { %564 = vrot.lane.b32.xlu1 %v556_v12, %s1477_s24 }
  0xb2   : > { %1017 = vrot.lane.b32.xlu0 %v1006_v13, %s1478_s25  ;;  %v1387_v13 = vld [vmem:[%s1716_s1 + $0x68] sm:$0xff] }
  0xb3   : > { %1015 = vrot.lane.b32.xlu1 %v1527_v9, %s1478_s25 }
  0xb6   : > { %1120 = vrot.lane.b32.xlu0 %v1527_v9, %s1479_s26 }
  0xb7   : > { %1013 = vrot.lane.b32.xlu1 %v1520_v8, %s1478_s25 }
  0xba   : > { %1118 = vrot.lane.b32.xlu0 %v1520_v8, %s1479_s26  ;;  %v1363_v8 = vld [vmem:[%s1716_s1 + $0x28] sm:$0xff] }
  0xbb   : > { %1122 = vrot.lane.b32.xlu1 %v1114_v14, %s1479_s26 }
 0x100   : > { %v682_v17 = vpop.permute.xlu0 %681 }
 0x101   : > { %v253_v18 = vpop.permute.xlu1 %252 }
 0x104   : > { %v787_v19 = vpop.permute.xlu0 %786 }
 0x105   : > { %v249_v20 = vpop.permute.xlu1 %248 }
 0x108   : > { %v678_v23 = vpop.permute.xlu0 %677 }
 0x109   : > { %v783_v24 = vpop.permute.xlu1 %782 }
 0x10c   : > { %v251_v28 = vpop.permute.xlu0 %250 }
 0x10d   : > { %v680_v27 = vpop.permute.xlu1 %679  ;;  %v256_v30 = vsel %vm254_vm6, %v251_v28, %v253_v18  ;;  %v255_v32 = vsel %vm254_vm6, %v249_v20, %v251_v28  ;;  %v1392_v18 = vld [vmem:[%s1716_s1 + $0x70] sm:$0xff]  ;;  %v1369_v20 = vld [vmem:[%s1716_s1 + $0x38] sm:$0xff]  ;;  %v1398_v28 = vld [vmem:[%s1716_s1 + $0x80] sm:$0xff] }
 0x10e   : > { %v1550_v31 = vsel %vm683_vm7, %v680_v27, %v682_v17  ;;  %v1552_v33 = vsel %vm683_vm7, %v678_v23, %v680_v27  ;;  %1354 = vmatprep.subr.msk.mxu1 %vm264_vm8, %v256_v30  ;;  %v1393_v23 = vld [vmem:[%s1716_s1 + $0x78] sm:$0xff]  ;;  %v1399_v30 = vld [vmem:[%s1716_s1 + $0x88] sm:$0xff] }
 0x10f   : > { %1376 = vmatprep.subr.msk.mxu0 %vm264_vm8, %v1550_v31  ;;  %1355 = vmatpush1.msk.msra.mxu1 %vm264_vm8, %v255_v32 }
 0x110   : > { %1377 = vmatpush1.msk.msra.mxu0 %vm264_vm8, %v1552_v33  ;;  %1356 = vmatmul.mubr.msk.f32.vlgmr.msra.gmra.mrb[0].mxu1 %vm257_vm10, %v1352_v34  ;;  %v447_v39 = vpop.permute.xlu0 %446 }
 0x111   : > { %v451_v38 = vpop.permute.xlu1 %450  ;;  %1358 = vmatprep.subr.msk.mxu1 %vm264_vm8, %v240_v35  ;;  %339 = vmatprep.mubr.f32.mxu1 %v1470_v0 }
 0x112   : > { %1359 = vmatpush1.msk.msra.mxu1 %vm264_vm8, %v239_v37  ;;  %1378 = vmatmul.mubr.msk.f32.vlgmr.msra.gmra.mrb[0].mxu0 %vm257_vm10, %v1374_v36 }
 0x113   : > { %874 = vmatprep.mubr.f32.mxu0 %v1470_v0 }
 0x114   : > { %1357 = vmatmul.mubr.msk.f32.gmra.mrb[2].mxu1 %vm257_vm10, %v1353_v40  ;;  %v449_v44 = vpop.permute.xlu0 %448 }
 0x115   : > { %v785_v43 = vpop.permute.xlu1 %784  ;;  %v453_v47 = vsel %vm452_vm13, %v447_v39, %v449_v44  ;;  %v454_v48 = vsel %vm452_vm13, %v449_v44, %v451_v38  ;;  %422 = vmatprep.mubr.f32.mxu1 %v1470_v0 }
 0x116   : > { %v789_v45 = vsel %vm788_vm12, %v783_v24, %v785_v43  ;;  %v790_v46 = vsel %vm788_vm12, %v785_v43, %v787_v19  ;;  %v457_v52 = vsel %vm1580_vm14, %v453_v47, 0.0  ;;  %v458_v53 = vsel %vm1584_vm15, %v454_v48, 0.0 }
 0x117   : > { %v793_v50 = vsel %vm1580_vm14, %v789_v45, 0.0  ;;  %v794_v51 = vsel %vm1584_vm15, %v790_v46, 0.0  ;;  %1364 = vmatprep.subr.msk.mxu1 %vm264_vm8, %v458_v53 }
 0x118   : > { %1382 = vmatprep.subr.msk.mxu0 %vm264_vm8, %v794_v51  ;;  %v899_v56 = vpop.permute.xlu0 %898  ;;  %1360 = vmatmul.mubr.msk.f32.vlgmr.msra.gmra.mrb[0].mxu1 %vm257_vm10, %v241_v49 }
 0x119   : > { %1383 = vmatpush1.msk.msra.mxu0 %vm264_vm8, %v793_v50  ;;  %v901_v55 = vpop.permute.xlu1 %900  ;;  %1365 = vmatpush1.msk.msra.mxu1 %vm264_vm8, %v457_v52 }
 0x11a   : > { %v904_v57 = vsel %vm902_vm0, %v899_v56, %v901_v55  ;;  %428 = vmatprep.mubr.f32.mxu1 %v1470_v0  ;;  %1384 = vmatmul.mubr.msk.f32.vlgmr.msra.gmra.mrb[0].mxu0 %vm257_vm10, %v1380_v54 }
 0x11b   : > { %v908_v59 = vsel %vm1546_vm11, %v904_v57, 0.0  ;;  %880 = vmatprep.mubr.f32.mxu0 %v1470_v0 }
 0x11c   : > { %1388 = vmatprep.subr.msk.mxu0 %vm264_vm8, %v908_v59  ;;  %v561_v62 = vpop.permute.xlu0 %560  ;;  %1361 = vmatmul.mubr.msk.f32.gmra.mrb[2].mxu1 %vm257_vm10, %v242_v58 }
 0x11d   : > { %v897_v61 = vpop.permute.xlu1 %896  ;;  %538 = vmatprep.mubr.f32.mxu1 %v1470_v0 }
 0x11e   : > { %v903_v63 = vsel %vm902_vm0, %v897_v61, %v899_v56  ;;  %1385 = vmatmul.mubr.msk.f32.gmra.mrb[2].mxu0 %vm257_vm10, %v1381_v60 }
 0x11f   : > { %v907_v2 = vsel %vm1542_vm9, %v903_v63, 0.0  ;;  %988 = vmatprep.mubr.f32.mxu0 %v1470_v0 }
 0x120   : > { %1389 = vmatpush1.msk.msra.mxu0 %vm264_vm8, %v907_v2  ;;  %v563_v5 = vpop.permute.xlu0 %562  ;;  %1366 = vmatmul.mubr.msk.f32.vlgmr.msra.gmra.mrb[0].mxu1 %vm257_vm10, %v1362_v1 }
 0x121   : > { %v565_v4 = vpop.permute.xlu1 %564  ;;  %v567_v6 = vsel %vm566_vm1, %v561_v62, %v563_v5  ;;  %544 = vmatprep.mubr.f32.mxu1 %v1470_v0 }
 0x122   : > { %v568_v7 = vsel %vm566_vm1, %v563_v5, %v565_v4  ;;  %v571_v9 = vsel %vm1542_vm9, %v567_v6, 0.0  ;;  %1390 = vmatmul.mubr.msk.f32.vlgmr.msra.gmra.mrb[0].mxu0 %vm257_vm10, %v1386_v3 }
 0x123   : > { %v572_v10 = vsel %vm1546_vm11, %v568_v7, 0.0  ;;  %994 = vmatprep.mubr.f32.mxu0 %v1470_v0 }
 0x124   : > { %1370 = vmatprep.subr.msk.mxu1 %vm264_vm8, %v572_v10  ;;  %v1018_v12 = vpop.permute.xlu0 %1017  ;;  %1367 = vmatmul.mubr.msk.f32.gmra.mrb[2].mxu1 %vm257_vm10, %v1363_v8 }
 0x125   : > { %v1016_v11 = vpop.permute.xlu1 %1015  ;;  %1371 = vmatpush1.msk.msra.mxu1 %vm264_vm8, %v571_v9  ;;  %652 = vmatprep.mubr.f32.mxu1 %v1470_v0 }
 0x126   : > { %v1021_v14 = vsel %vm1019_vm2, %v1016_v11, %v1018_v12  ;;  %1409 = vmatprep.subr.msk.mxu1 %vm264_vm8, %v1550_v31  ;;  %1391 = vmatmul.mubr.msk.f32.gmra.mrb[2].mxu0 %vm257_vm10, %v1387_v13 }
 0x127   : > { %1394 = vmatprep.subr.msk.mxu0 %vm264_vm8, %v1021_v14  ;;  %1096 = vmatprep.mubr.f32.mxu0 %v1470_v0 }
 0x128   : > { %v1121_v17 = vpop.permute.xlu0 %1120  ;;  %1372 = vmatmul.mubr.msk.f32.vlgmr.msra.gmra.mrb[0].mxu1 %vm257_vm10, %v1368_v15 }
 0x129   : > { %v1014_v16 = vpop.permute.xlu1 %1013  ;;  %1410 = vmatpush1.msk.msra.mxu1 %vm264_vm8, %v1552_v33  ;;  %658 = vmatprep.mubr.f32.mxu1 %v1470_v0 }
 0x12a   : > { %v1020_v19 = vsel %vm1019_vm2, %v1014_v16, %v1016_v11 }
 0x12b   : > { %1395 = vmatpush1.msk.msra.mxu0 %vm264_vm8, %v1020_v19 }
 0x12c   : > { %1396 = vmatmul.mubr.msk.f32.vlgmr.msra.gmra.mrb[0].mxu0 %vm257_vm10, %v1392_v18  ;;  %v1119_v22 = vpop.permute.xlu0 %1118  ;;  %1373 = vmatmul.mubr.msk.f32.gmra.mrb[2].mxu1 %vm257_vm10, %v1369_v20 }
 0x12d   : > { %v1123_v21 = vpop.permute.xlu1 %1122  ;;  %1102 = vmatprep.mubr.f32.mxu0 %v1470_v0  ;;  %v1125_v25 = vsel %vm1124_vm3, %v1119_v22, %v1121_v17  ;;  %766 = vmatprep.mubr.f32.mxu1 %v1470_v0 }
 0x12e   : > { %v1126_v24 = vsel %vm1124_vm3, %v1121_v17, %v1123_v21  ;;  %v1129_v27 = vsel %vm1580_vm14, %v1125_v25, 0.0 }
 0x12f   : > { %v1130_v26 = vsel %vm1584_vm15, %v1126_v24, 0.0 }
 0x130   : > { %1397 = vmatmul.mubr.msk.f32.gmra.mrb[2].mxu0 %vm257_vm10, %v1393_v23  ;;  %1400 = vmatprep.subr.msk.mxu0 %vm264_vm8, %v1130_v26 }
 0x131   : > { %1401 = vmatpush1.msk.msra.mxu0 %vm264_vm8, %v1129_v27  ;;  %1210 = vmatprep.mubr.f32.mxu0 %v1470_v0 }
 0x134   : > { %1402 = vmatmul.mubr.msk.f32.vlgmr.msra.gmra.mrb[0].mxu0 %vm257_vm10, %v1398_v28  ;;  %1379 = vmatmul.mubr.msk.f32.vlgmr.msra.gmra.mrb[2].mxu1 %vm257_vm10, %v1375_v29 }
 0x135   : > { %1216 = vmatprep.mubr.f32.mxu0 %v1470_v0 }
 0x138   : > { %1403 = vmatmul.mubr.msk.f32.gmra.mrb[2].mxu0 %vm257_vm10, %v1399_v30 }
 0x1fb   : > { %v654_v31 = vpop.f32.mrb[0].mxu1 }
 0x1fc   : > { %v656_v32 = vpop.f32.mrb[1].mxu1 }
 0x207   : > { %v1212_v33 = vpop.f32.mrb[0].mxu0  ;;  %v768_v35 = vpop.f32.mrb[2].mxu1 }
 0x208   : > { %v1411_v34 = vadd.f32 %v1212_v33, %v654_v31  ;;  %v1214_v36 = vpop.f32.mrb[1].mxu0  ;;  %v770_v38 = vpop.f32.mrb[3].mxu1 }
 0x209   : > { %v1412_v37 = vadd.f32 %v1214_v36, %v656_v32 }
 0x20a   : > { %1227 = vst [vmem:[%s178_s16] sm:$0xff] %v1411_v34  ;;  %v1237_v0 = vmul.f32 %v1411_v34, %v1411_v34 }
 0x20b   : > { %1228 = vst [vmem:[%s178_s16 + $0x8] sm:$0xff] %v1412_v37  ;;  %v1218_v39 = vpop.f32.mrb[2].mxu0  ;;  %v1231_v40 = vadd.f32 %v1412_v37, %v1411_v34  ;;  %v1238_v41 = vmul.f32 %v1412_v37, %v1412_v37 }
 0x20c   : > { %v1413_v42 = vadd.f32 %v1218_v39, %v768_v35  ;;  %v1220_v43 = vpop.f32.mrb[3].mxu0 }
 0x20d   : > { %v1414_v44 = vadd.f32 %v1220_v43, %v770_v38  ;;  %1232 = vadd.xlane.f32.xlu1 %v1231_v40  ;;  %v1241_v45 = vadd.f32 %v1238_v41, %v1237_v0 }
 0x20e   : > { %1229 = vst [vmem:[%s178_s16 + $0x10] sm:$0xff] %v1413_v42  ;;  %v1239_v46 = vmul.f32 %v1413_v42, %v1413_v42 }
 0x20f   : > { %1230 = vst [vmem:[%s178_s16 + $0x18] sm:$0xff] %v1414_v44  ;;  %v1234_v47 = vadd.f32 %v1414_v44, %v1413_v42  ;;  %v1240_v48 = vmul.f32 %v1414_v44, %v1414_v44 }
 0x211   : > { %1235 = vadd.xlane.f32.xlu0 %v1234_v47  ;;  %v1244_v49 = vadd.f32 %v1240_v48, %v1239_v46 }
 0x213   : > { %1245 = vadd.xlane.f32.xlu1 %v1244_v49 }
 0x215   : > { %1242 = vadd.xlane.f32.xlu0 %v1241_v45 }
 0x29a   : > { %v1233_v50 = vpop.xlane.xlu1 %1232 }
 0x29e   : > { %v1236_v51 = vpop.xlane.xlu0 %1235 }
 0x2a0   : > { %v1246_v52 = vpop.xlane.xlu1 %1245 }
 0x2a1   : > { %v1249_v53 = vsel %vm1247_vm4, %v1236_v51, %v1246_v52 }
 0x2a2   : > { %1252 = vst.msk [vmem:[%s183_s20 + $0x8] sm:$0xff] %vm1250_vm5, %v1249_v53  ;;  %v1243_v54 = vpop.xlane.xlu0 %1242 }
 0x2a3   : > { %v1248_v55 = vsel %vm1247_vm4, %v1233_v50, %v1243_v54 }
 0x2a4   : > { %1251 = vst.msk [vmem:[%s183_s20] sm:$0xff] %vm1250_vm5, %v1248_v55 }
 0x2a5 PF: > { %s14_s12 = sadd.s32 1, %s1468_s12  }
 0x2a6   : > { %p11_p4 = scmp.ge.s32.totalorder %s14_s12, 4  }
 0x2a8   :  { %13 = sbr.rel (!%p11_p4) target bundleno = 1 (0x1), region = 78 }

</bundles_post_ra>
